<compile_context>
chip_gen: v5e
topology: v5e:2x2
jax: 0.10.0
libtpu: 0.0.40
codegen_flags: <defaults>
</compile_context>

<pallas_src>
import jax
import jax.numpy as jnp
from jax import lax
from jax.experimental import pallas as pl
from jax.experimental.pallas import tpu as pltpu


def _round_up(n, m):
    return ((n + m - 1) // m) * m


def _make_kernel(tm, m_total, m_pad, inv_m):
    """Fused score-conv + weight-map-conv + sigmoid + 2x2 pool + product + mean."""
    need_mask = (m_pad != m_total)

    def kernel(a_ref, w_ref, bias_ref, o_ref):
        i = pl.program_id(0)

        @pl.when(i == 0)
        def _init():
            o_ref[...] = jnp.zeros_like(o_ref)

        # Single lane-dense matmul: lane 0 = score conv pre-bias, lanes 1..4 =
        # the four 1x1-conv pre-activations at the 2x2 pool sub-pixels.
        y = jnp.dot(a_ref[...], w_ref[...], preferred_element_type=jnp.float32)
        y = y + bias_ref[...]                                  # (1,128) broadcast

        score = y[:, 0:1]                                      # (TM, 1)
        wmat = jnp.sum(jax.nn.sigmoid(y[:, 1:5]), axis=1,
                       keepdims=True) * 0.25                   # 2x2 avg pool

        contrib = score * wmat
        if need_mask:  # zero out the rows that pad M up to a multiple of TM
            row = lax.broadcasted_iota(jnp.int32, (tm, 1), 0) + i * tm
            contrib = contrib * (row < m_total).astype(jnp.float32)

        o_ref[...] += jnp.sum(contrib).reshape(1, 1)

        @pl.when(i == pl.num_programs(0) - 1)
        def _finalize():
            o_ref[...] = o_ref[...] * inv_m

    return kernel


def map2mat_weighted_average_predictor(x, w_score, b_score, w_wmp, b_wmp, *, tm=512):
    """x: (N, C, H, W) float32 (NCHW).  Returns the scalar weighted-average score."""
    N, C, H, W = x.shape
    assert H % 2 == 0 and W % 2 == 0, "converter (2x2 avg pool) needs even H, W"
    K = 4
    Hs, Ws_ = H // 2, W // 2          # stride-2, pad-1, k=4 conv output size
    M = N * Hs * Ws_
    Kf = C * K * K                     # 64 for C=4

    # ---- glue: im2col for the 4x4/stride-2/pad-1 score conv -----------------
    # Feature order c*16 + kh*4 + kw, matching w_score (OIHW) flattening.
    xp = jnp.pad(x, ((0, 0), (0, 0), (1, 1), (1, 1)))
    patches = [xp[:, :, i:i + 2 * Hs:2, j:j + 2 * Ws_:2]
               for i in range(K) for j in range(K)]           # 16 x (N,C,Hs,Ws)
    P = jnp.stack(patches, axis=2)                            # (N, C, 16, Hs, Ws)
    A = P.transpose(0, 3, 4, 1, 2).reshape(M, Kf)             # (M, C*16)

    # ---- tiling over M (pad rows to a multiple of TM, masked in-kernel) -----
    tm = min(tm, _round_up(M, 8))
    m_pad = _round_up(M, tm)
    if m_pad != M:
        A = jnp.pad(A, ((0, m_pad - M), (0, 0)))
    A = A.astype(jnp.bfloat16)

    # ---- fused lane-dense RHS: (C*16, 128) -----------------------------------
    # lane 0: score conv weights; lanes 1..4: w_wmp at rows (c*16 + (1+dy)*4 + (1+dx)).
    w_all = jnp.zeros((Kf, 128), jnp.float32)
    w_all = w_all.at[:, 0].set(w_score.reshape(-1))
    wmp_vec = w_wmp.reshape(-1)                               # (C,)
    c_rows = jnp.arange(C) * (K * K)
    for dy in range(2):
        for dx in range(2):
            rows = c_rows + (1 + dy) * K + (1 + dx)
            w_all = w_all.at[rows, 1 + dy * 2 + dx].set(wmp_vec)
    w_all = w_all.astype(jnp.bfloat16)

    # Per-lane bias vector (f32): lane 0 = score bias, lanes 1..4 = wmp bias.
    bias_lane = jnp.zeros((128,), jnp.float32).at[0].set(b_score)
    bias_lane = bias_lane.at[1:5].set(b_wmp).reshape(1, 128)

    grid = (m_pad // tm,)
    kernel = _make_kernel(tm, M, m_pad, 1.0 / M)

    out = pl.pallas_call(
        kernel,
        out_shape=jax.ShapeDtypeStruct((1, 1), jnp.float32),
        grid_spec=pltpu.PrefetchScalarGridSpec(
            num_scalar_prefetch=0,
            grid=grid,
            in_specs=[pl.BlockSpec((tm, Kf), lambda i: (i, 0)),
                      pl.BlockSpec((Kf, 128), lambda i: (0, 0)),
                      pl.BlockSpec((1, 128), lambda i: (0, 0))],
            out_specs=pl.BlockSpec((1, 1), lambda i: (0, 0)),
        ),
        compiler_params=pltpu.CompilerParams(
            dimension_semantics=("arbitrary",),
            vmem_limit_bytes=32 * 1024 * 1024),
        cost_estimate=pl.CostEstimate(
            flops=2 * m_pad * Kf * 128,
            transcendentals=4 * m_pad,
            bytes_accessed=A.size * 2 + w_all.size * 2 + 128 * 4 + 4),
    )(A, w_all, bias_lane)
    # TODO(synk): assemble im2col tiles in-kernel from NHWC x (pl.ANY + strided
    # DMA) to cut the 4x wrapper-side HBM blow-up of A.
    return out[0, 0]


def _reference(x, w_score, b_score, w_wmp, b_wmp):
    """Pure-JAX f32 reference mirroring the PyTorch module semantics."""
    dn = ('NCHW', 'OIHW', 'NCHW')
    score = lax.conv_general_dilated(x, w_score, (2, 2), ((1, 1), (1, 1)),
                                     dimension_numbers=dn) + b_score
    wmap = jax.nn.sigmoid(
        lax.conv_general_dilated(x, w_wmp, (1, 1), ((0, 0), (0, 0)),
                                 dimension_numbers=dn) + b_wmp)
    N, _, H, W = x.shape
    wmat = wmap.reshape(N, 1, H // 2, 2, W // 2, 2).mean(axis=(3, 5))
    return jnp.mean(score * wmat)


if __name__ == "__main__":
    key = jax.random.PRNGKey(0)
    k_x, k_ws, k_bs, k_ww, k_bw = jax.random.split(key, 5)

    N, C, H, W = 2, 4, 16, 16
    x = jax.random.normal(k_x, (N, C, H, W), dtype=jnp.float32)

    # Deterministic synthetic parameters (PyTorch-conv-shaped, OIHW).
    w_score = 0.05 * jax.random.normal(k_ws, (1, C, 4, 4), dtype=jnp.float32)
    b_score = jnp.float32(0.1 * jax.random.normal(k_bs, ()))
    w_wmp = 0.3 * jax.random.normal(k_ww, (1, C, 1, 1), dtype=jnp.float32)
    b_wmp = jnp.float32(0.1 * jax.random.normal(k_bw, ()))

    result = map2mat_weighted_average_predictor(x, w_score, b_score, w_wmp, b_wmp)
    result = jax.block_until_ready(result)

    ref = _reference(x, w_score, b_score, w_wmp, b_wmp)
    # Tolerance accounts for the bf16 cast of A / fused weights (f32 reference).
    assert jnp.allclose(result, ref, rtol=5e-2, atol=5e-3), (result, ref)

    print("KERNEL_OK")
</pallas_src>

<mosaic_0001>
module attributes {stable_mosaic.version = 11 : i64} {
  func.func @kernel(%arg0: i32, %arg1: memref<128x64xbf16, #tpu.memory_space<vmem>>, %arg2: memref<64x128xbf16, #tpu.memory_space<vmem>>, %arg3: memref<1x128xf32, #tpu.memory_space<vmem>>, %arg4: memref<1x1xf32, #tpu.memory_space<vmem>>) attributes {dimension_semantics = [#tpu.dimension_semantics<arbitrary>], iteration_bounds = array<i64: 1>, scalar_prefetch = 0 : i64, scratch_operands = 0 : i64, tpu.core_type = #tpu.core_type<tc>, window_params = [{transform_indices = @transform_0, window_bounds = array<i64: 128, 64>}, {pipeline_mode = #tpu.pipeline_mode<synchronous>, transform_indices = @transform_1, window_bounds = array<i64: 64, 128>}, {pipeline_mode = #tpu.pipeline_mode<synchronous>, transform_indices = @transform_2, window_bounds = array<i64: 1, 128>}, {pipeline_mode = #tpu.pipeline_mode<synchronous>, transform_indices = @transform_3, window_bounds = array<i64: 1, 1>}]} {
    %c0_i32 = arith.constant 0 : i32
    %0 = arith.cmpi eq, %arg0, %c0_i32 : i32
    %1 = arith.extui %0 : i1 to i32
    %c0_i32_0 = arith.constant 0 : i32
    %2 = arith.cmpi ne, %1, %c0_i32_0 : i32
    scf.if %2 {
      %cst_16 = arith.constant 0.000000e+00 : f32
      %32 = vector.broadcast %cst_16 : f32 to vector<1x1xf32>
      %c0_17 = arith.constant 0 : index
      %c0_18 = arith.constant 0 : index
      %33 = vector.load %arg4[%c0_17, %c0_18] : memref<1x1xf32, #tpu.memory_space<vmem>>, vector<1x1xf32>
      tpu.vector_store %arg4[%c0_17, %c0_18], %32 {strides = array<i32>} : memref<1x1xf32, #tpu.memory_space<vmem>>, vector<1x1xf32>,
    } else {
    }
    %c0 = arith.constant 0 : index
    %c0_1 = arith.constant 0 : index
    %3 = vector.load %arg1[%c0, %c0_1] : memref<128x64xbf16, #tpu.memory_space<vmem>>, vector<128x64xbf16>
    %c0_2 = arith.constant 0 : index
    %c0_3 = arith.constant 0 : index
    %4 = vector.load %arg2[%c0_2, %c0_3] : memref<64x128xbf16, #tpu.memory_space<vmem>>, vector<64x128xbf16>
    %cst = arith.constant dense<0.000000e+00> : vector<128x128xf32>
    %5 = tpu.matmul %3, %4, %cst {dimension_numbers = #tpu.dot_dimension_numbers<[1], [0], [0], [1], [0, 0, 1, 1], [], []>} : vector<128x64xbf16>, vector<64x128xbf16>, vector<128x128xf32> -> vector<128x128xf32>
    %c0_4 = arith.constant 0 : index
    %c0_5 = arith.constant 0 : index
    %6 = vector.load %arg3[%c0_4, %c0_5] : memref<1x128xf32, #tpu.memory_space<vmem>>, vector<1x128xf32>
    %7 = vector.broadcast %6 : vector<1x128xf32> to vector<128x128xf32>
    %8 = arith.addf %5, %7 : vector<128x128xf32>
    %9 = vector.extract_strided_slice %8 {offsets = [0, 0], sizes = [128, 1], strides = [1, 1]} : vector<128x128xf32> to vector<128x1xf32>
    %10 = vector.extract_strided_slice %8 {offsets = [0, 1], sizes = [128, 4], strides = [1, 1]} : vector<128x128xf32> to vector<128x4xf32>
    %11 = arith.negf %10 : vector<128x4xf32>
    %12 = math.exp %11 : vector<128x4xf32>
    %cst_6 = arith.constant 1.000000e+00 : f32
    %13 = vector.broadcast %cst_6 : f32 to vector<128x4xf32>
    %14 = arith.addf %13, %12 : vector<128x4xf32>
    %15 = arith.divf %13, %14 : vector<128x4xf32>
    %cst_7 = arith.constant dense<0.000000e+00> : vector<128xf32>
    %16 = vector.multi_reduction <add>, %15, %cst_7 [1] : vector<128x4xf32> to vector<128xf32>
    %17 = vector.shape_cast %16 : vector<128xf32> to vector<128x1xf32>
    %cst_8 = arith.constant 2.500000e-01 : f32
    %18 = vector.broadcast %cst_8 : f32 to vector<128x1xf32>
    %19 = arith.mulf %17, %18 : vector<128x1xf32>
    %20 = arith.mulf %9, %19 : vector<128x1xf32>
    %c0_9 = arith.constant 0 : index
    %c0_10 = arith.constant 0 : index
    %21 = vector.load %arg4[%c0_9, %c0_10] : memref<1x1xf32, #tpu.memory_space<vmem>>, vector<1x1xf32>
    %22 = vector.shape_cast %20 : vector<128x1xf32> to vector<1x128x1xf32>
    %cst_11 = arith.constant dense<0.000000e+00> : vector<1xf32>
    %23 = vector.multi_reduction <add>, %22, %cst_11 [1, 2] : vector<1x128x1xf32> to vector<1xf32>
    %24 = vector.shape_cast %23 : vector<1xf32> to vector<1x1x1xf32>
    %25 = vector.extract %24[0, 0, 0] : f32 from vector<1x1x1xf32>
    %26 = vector.broadcast %25 : f32 to vector<1x1xf32>
    %27 = arith.addf %21, %26 : vector<1x1xf32>
    %c0_12 = arith.constant 0 : index
    %c0_13 = arith.constant 0 : index
    %28 = vector.load %arg4[%c0_12, %c0_13] : memref<1x1xf32, #tpu.memory_space<vmem>>, vector<1x1xf32>
    tpu.vector_store %arg4[%c0_12, %c0_13], %27 {strides = array<i32>} : memref<1x1xf32, #tpu.memory_space<vmem>>, vector<1x1xf32>,
    %c0_i32_14 = arith.constant 0 : i32
    %29 = arith.cmpi eq, %arg0, %c0_i32_14 : i32
    %30 = arith.extui %29 : i1 to i32
    %c0_i32_15 = arith.constant 0 : i32
    %31 = arith.cmpi ne, %30, %c0_i32_15 : i32
    scf.if %31 {
      %c0_16 = arith.constant 0 : index
      %c0_17 = arith.constant 0 : index
      %32 = vector.load %arg4[%c0_16, %c0_17] : memref<1x1xf32, #tpu.memory_space<vmem>>, vector<1x1xf32>
      %cst_18 = arith.constant 7.812500e-03 : f32
      %33 = vector.broadcast %cst_18 : f32 to vector<1x1xf32>
      %34 = arith.mulf %32, %33 : vector<1x1xf32>
      %c0_19 = arith.constant 0 : index
      %c0_20 = arith.constant 0 : index
      %35 = vector.load %arg4[%c0_19, %c0_20] : memref<1x1xf32, #tpu.memory_space<vmem>>, vector<1x1xf32>
      tpu.vector_store %arg4[%c0_19, %c0_20], %34 {strides = array<i32>} : memref<1x1xf32, #tpu.memory_space<vmem>>, vector<1x1xf32>,
    } else {
    }
    return
  }
  func.func @transform_0(%arg0: i32) -> (i32, i32) {
    %c0_i32 = arith.constant 0 : i32
    %c0_i32_0 = arith.constant 0 : i32
    return %arg0, %c0_i32 : i32, i32
  }
  func.func @transform_1(%arg0: i32) -> (i32, i32) {
    %c0_i32 = arith.constant 0 : i32
    %c0_i32_0 = arith.constant 0 : i32
    %c0_i32_1 = arith.constant 0 : i32
    return %c0_i32, %c0_i32_0 : i32, i32
  }
  func.func @transform_2(%arg0: i32) -> (i32, i32) {
    %c0_i32 = arith.constant 0 : i32
    %c0_i32_0 = arith.constant 0 : i32
    %c0_i32_1 = arith.constant 0 : i32
    return %c0_i32, %c0_i32_0 : i32, i32
  }
  func.func @transform_3(%arg0: i32) -> (i32, i32) {
    %c0_i32 = arith.constant 0 : i32
    %c0_i32_0 = arith.constant 0 : i32
    %c0_i32_1 = arith.constant 0 : i32
    return %c0_i32, %c0_i32_0 : i32, i32
  }
}

</mosaic_0001>

<bundles_post_ra>
// kernel: tpu_custom_call.1
= control target key start
LH: loop header
LB: loop body
LE: loop exit
PB: predicated region body
PF: predicated region fallthrough
CT: control target
= control target key end

     0   :  { %s1459_s0 = inlined_call_operand.vmem [shape: bf16[128,64], index: 0, kind: input, shape index: {}]   ;;  %s1460_s1 = inlined_call_operand.vmem [shape: bf16[64,128], index: 1, kind: input, shape index: {}]   ;;  %s1461_s2 = inlined_call_operand.vmem [shape: f32[1,128], index: 2, kind: input, shape index: {}]   ;;  %s1462_s3 = inlined_call_operand.hbm [shape: f32[1,1], index: 3, kind: output, shape index: {}]  }
   0x1   :  { %v788_v0 = vld [vmem:[%s1460_s1 + $0x18] sm:$0xff]  ;;  %v787_v1 = vld [vmem:[%s1460_s1 + $0x10] sm:$0xff] }
   0x2   :  { %143 = vmatpush.bf16.msra.mxu0 %v788_v0  ;;  %789 = vmatpush.bf16.msra.mxu1 %v788_v0 }
   0x3   :  { %790 = vmatpush.bf16.msra.mxu2 %v788_v0  ;;  %791 = vmatpush.bf16.msra.mxu3 %v788_v0 }
   0x4   :  { %8 = vsyncpa [#allocation3], 0  ;;  %v786_v2 = vld [vmem:[%s1460_s1 + $0x8] sm:$0xff]  ;;  %v785_v3 = vld [vmem:[%s1460_s1] sm:$0xff]  ;;  %vm114_vm0 = vcmask 523264   ;;  %s899_s10 = smov [#allocation2]  }
   0x5   :  { %v777_v4 = vld [vmem:[%s1459_s0] sm:$0xff]  ;;  %v779_v5 = vld [vmem:[%s1459_s0 + $0x10] sm:$0xff]  ;;  %v778_v8 = vld [vmem:[%s1459_s0 + $0x8] sm:$0xff]  ;;  %s694_s11 = sshll.u32 %s899_s10, 4  ;;  %s696_s14 = sshll.u32 %s1462_s3, 4  ;;  %s695_s11 = int_to_ptr.vmem [resolvable:$true] %s694_s11  ;;  %s697_s14 = int_to_ptr.hbm [resolvable:$true] %s696_s14 }
   0x6   :  { %144 = vmatpush.bf16.msra.mxu0 %v787_v1  ;;  %792 = vmatpush.bf16.msra.mxu1 %v787_v1  ;;  %v781_v6 = vld [vmem:[%s1459_s0 + $0x20] sm:$0xff]  ;;  %v783_v7 = vld [vmem:[%s1459_s0 + $0x30] sm:$0xff]  ;;  %v780_v9 = vld [vmem:[%s1459_s0 + $0x18] sm:$0xff] }
   0x7   :  { %793 = vmatpush.bf16.msra.mxu2 %v787_v1  ;;  %794 = vmatpush.bf16.msra.mxu3 %v787_v1  ;;  %v782_v10 = vld [vmem:[%s1459_s0 + $0x28] sm:$0xff]  ;;  %v784_v11 = vld [vmem:[%s1459_s0 + $0x38] sm:$0xff]  ;;  %v967_v12 = vld [vmem:[%s1461_s2] ss:$0 sm:$0xff]  ;;  %s897_s0 = smov 127  }
   0xa   :  { %145 = vmatpush.bf16.msra.mxu0 %v786_v2  ;;  %795 = vmatpush.bf16.msra.mxu1 %v786_v2 }
   0xb   :  { %796 = vmatpush.bf16.msra.mxu2 %v786_v2  ;;  %797 = vmatpush.bf16.msra.mxu3 %v786_v2 }
   0xe   :  { %146 = vmatpush.bf16.msra.mxu0 %v785_v3  ;;  %798 = vmatpush.bf16.msra.mxu1 %v785_v3 }
   0xf   :  { %799 = vmatpush.bf16.msra.mxu2 %v785_v3  ;;  %800 = vmatpush.bf16.msra.mxu3 %v785_v3 }
  0x11   :  { %753 = vmatmul.msk.bf16.vlgmr.msra.gmra.mxu0 %vm114_vm0, %v777_v4  ;;  %755 = vmatmul.msk.bf16.vlgmr.msra.gmra.mxu1 %vm114_vm0, %v779_v5 }
  0x12   :  { %757 = vmatmul.msk.bf16.vlgmr.msra.gmra.mxu2 %vm114_vm0, %v781_v6  ;;  %759 = vmatmul.msk.bf16.vlgmr.msra.gmra.mxu3 %vm114_vm0, %v783_v7 }
  0x21   :  { %754 = vmatmul.msk.bf16.gmra.mxu0 %vm114_vm0, %v778_v8  ;;  %756 = vmatmul.msk.bf16.gmra.mxu1 %vm114_vm0, %v780_v9 }
  0x22   :  { %758 = vmatmul.msk.bf16.gmra.mxu2 %vm114_vm0, %v782_v10  ;;  %760 = vmatmul.msk.bf16.gmra.mxu3 %vm114_vm0, %v784_v11 }
  0x8e   :  { %v148_v13 = vpop.f32.mrf.mxu0  ;;  %v158_v14 = vpop.f32.mrf.mxu1 }
  0x8f   :  { %v970_v15 = vadd.f32 %v967_v12, %v148_v13  ;;  %v973_v16 = vadd.f32 %v967_v12, %v158_v14 }
  0x91   :  { %v761_v17 = vmul.f32 -1.442695, %v970_v15  ;;  %v765_v18 = vmul.f32 -1.442695, %v973_v16 }
  0x93   :  { %807 = vpow2.f32 %v761_v17 }
  0x94   :  { %809 = vpow2.f32 %v765_v18 }
  0x95   :  { %v168_v19 = vpop.f32.mrf.mxu2  ;;  %v178_v20 = vpop.f32.mrf.mxu3 }
  0x96   :  { %v978_v21 = vadd.f32 %v967_v12, %v168_v19  ;;  %v981_v22 = vadd.f32 %v967_v12, %v178_v20  ;;  %v150_v23 = vpop.f32.mrf.mxu0  ;;  %v160_v24 = vpop.f32.mrf.mxu1 }
  0x97   :  { %v984_v25 = vadd.f32 %v967_v12, %v150_v23  ;;  %v987_v26 = vadd.f32 %v967_v12, %v160_v24 }
  0x98   :  { %v769_v27 = vmul.f32 -1.442695, %v978_v21  ;;  %v773_v28 = vmul.f32 -1.442695, %v981_v22 }
  0x99   :  { %v808_v29 = vpop.eup %807  ;;  %v762_v32 = vmul.f32 -1.442695, %v984_v25  ;;  %v766_v34 = vmul.f32 -1.442695, %v987_v26 }
  0x9a   :  { %v810_v30 = vpop.eup %809  ;;  %v991_v31 = vadd.f32 1.0, %v808_v29  ;;  %811 = vpow2.f32 %v769_v27 }
  0x9b   :  { %v994_v33 = vadd.f32 1.0, %v810_v30  ;;  %813 = vpow2.f32 %v773_v28 }
  0x9c   :  { %815 = vrcp.f32 %v991_v31  ;;  %v263_v43 = vand.u32 2147483648, %v991_v31  ;;  %v261_v48 = vand.u32 2147483647, %v991_v31  ;;  %vm257_vm1 = vweird.f32 %v991_v31 }
  0x9d   :  { %817 = vrcp.f32 %v994_v33  ;;  %v170_v35 = vpop.f32.mrf.mxu2  ;;  %v180_v36 = vpop.f32.mrf.mxu3  ;;  %v323_v42 = vand.u32 2147483648, %v994_v33  ;;  %v321_v47 = vand.u32 2147483647, %v994_v33  ;;  %vm317_vm2 = vweird.f32 %v994_v33 }
  0x9e   :  { %819 = vpow2.f32 %v762_v32  ;;  %v1000_v37 = vadd.f32 %v967_v12, %v170_v35  ;;  %v1003_v38 = vadd.f32 %v967_v12, %v180_v36  ;;  %v153_v39 = vpop.f32.mrf.mxu0  ;;  %v163_v40 = vpop.f32.mrf.mxu1  ;;  %v264_v58 = vor.u32 1.1754944e-38, %v263_v43 }
  0x9f   :  { %821 = vpow2.f32 %v766_v34  ;;  %v1006_v41 = vadd.f32 %v967_v12, %v153_v39  ;;  %v1012_v46 = vadd.f32 %v967_v12, %v163_v40  ;;  %v1029_v56 = vor.u32 1.1754944e-38, %v323_v42 }
  0xa0   :  { %v812_v44 = vpop.eup %811  ;;  %v770_v45 = vmul.f32 -1.442695, %v1000_v37  ;;  %v774_v51 = vmul.f32 -1.442695, %v1003_v38  ;;  %vm1037_vm3 = vcmp.eq.f32.partialorder %v321_v47, 8.507059e+37  ;;  %vm1042_vm5 = vcmp.eq.f32.partialorder %v261_v48, 8.507059e+37 }
  0xa1   :  { %v814_v49 = vpop.eup %813  ;;  %v1016_v50 = vadd.f32 1.0, %v812_v44  ;;  %v763_v54 = vmul.f32 -1.442695, %v1006_v41  ;;  %v767_v60 = vmul.f32 -1.442695, %v1012_v46 }
  0xa2   :  { %v1020_v52 = vpop.eup %815  ;;  %v1022_v53 = vadd.f32 1.0, %v814_v49  ;;  %823 = vpow2.f32 %v770_v45 }
  0xa3   :  { %v1026_v55 = vpop.eup %817  ;;  %825 = vrcp.f32 %v1016_v50  ;;  %v253_v57 = vmul.f32 %v1020_v52, %v991_v31  ;;  %vm258_vm4 = vweird.f32 %v1020_v52  ;;  %vm377_vm7 = vweird.f32 %v1016_v50 }
  0xa4   :  { %v820_v59 = vpop.eup %819  ;;  %827 = vrcp.f32 %v1022_v53  ;;  %v313_v61 = vmul.f32 %v1026_v55, %v994_v33  ;;  %vm318_vm6 = vweird.f32 %v1026_v55  ;;  %v381_v19 = vand.u32 2147483647, %v1016_v50  ;;  %vm1083_vm8 = vmor %vm257_vm1, %vm258_vm4 }
  0xa5   :  { %v822_v0 = vpop.eup %821  ;;  %v1046_v1 = vadd.f32 1.0, %v820_v59  ;;  %829 = vpow2.f32 %v774_v51  ;;  %v173_v2 = vpop.f32.mrf.mxu2  ;;  %v254_v4 = vsub.f32 1.0, %v253_v57  ;;  %vm1095_vm9 = vmor %vm317_vm2, %vm318_vm6  ;;  %v383_v31 = vand.u32 2147483648, %v1016_v50 }
  0xa6   :  { %v183_v3 = vpop.f32.mrf.mxu3  ;;  %v1049_v5 = vadd.f32 1.0, %v822_v0  ;;  %831 = vpow2.f32 %v763_v54  ;;  %v1052_v6 = vadd.f32 %v967_v12, %v173_v2  ;;  %v155_v7 = vpop.f32.mrf.mxu0  ;;  %v314_v13 = vsub.f32 1.0, %v313_v61 }
  0xa7   :  { %v1055_v8 = vadd.f32 %v967_v12, %v183_v3  ;;  %v165_v9 = vpop.f32.mrf.mxu1  ;;  %833 = vrcp.f32 %v1046_v1  ;;  %v1059_v10 = vadd.f32 %v967_v12, %v155_v7  ;;  %v255_v18 = vmul.f32 %v1020_v52, %v254_v4 }
  0xa8   :  { %v1062_v11 = vadd.f32 %v967_v12, %v165_v9  ;;  %v824_v14 = vpop.eup %823  ;;  %835 = vrcp.f32 %v1049_v5  ;;  %v771_v17 = vmul.f32 -1.442695, %v1052_v6  ;;  %v315_v29 = vmul.f32 %v1026_v55, %v314_v13 }
  0xa9   :  { %v1069_v20 = vpop.eup %825  ;;  %v1071_v23 = vadd.f32 1.0, %v824_v14  ;;  %837 = vpow2.f32 %v767_v60  ;;  %v764_v24 = vmul.f32 -1.442695, %v1059_v10  ;;  %v775_v27 = vmul.f32 -1.442695, %v1055_v8 }
  0xaa   :  { %v1075_v28 = vpop.eup %827  ;;  %839 = vpow2.f32 %v771_v17  ;;  %v256_v30 = vadd.f32 %v1020_v52, %v255_v18  ;;  %v373_v34 = vmul.f32 %v1069_v20, %v1016_v50  ;;  %v768_v36 = vmul.f32 -1.442695, %v1062_v11 }
  0xab   :  { %v830_v35 = vpop.eup %829  ;;  %841 = vrcp.f32 %v1071_v23  ;;  %vm378_vm10 = vweird.f32 %v1069_v20  ;;  %v316_v43 = vadd.f32 %v1026_v55, %v315_v29  ;;  %v433_v57 = vmul.f32 %v1075_v28, %v1022_v53 }
  0xac   :  { %v832_v40 = vpop.eup %831  ;;  %v1101_v42 = vadd.f32 1.0, %v830_v35  ;;  %843 = vpow2.f32 %v764_v24  ;;  %v260_v44 = vsel %vm1083_vm8, %v1020_v52, %v256_v30  ;;  %v374_v49 = vsub.f32 1.0, %v373_v34  ;;  %vm1150_vm13 = vmor %vm377_vm7, %vm378_vm10 }
  0xad   :  { %v1107_v45 = vpop.eup %833  ;;  %v1109_v33 = vadd.f32 1.0, %v832_v40  ;;  %845 = vpow2.f32 %v775_v27  ;;  %v175_v47 = vpop.f32.mrf.mxu2  ;;  %v265_v48 = vsel %vm1042_vm5, %v264_v58, %v260_v44  ;;  %v320_v52 = vsel %vm1095_vm9, %v1026_v55, %v316_v43 }
  0xae   :  { %v1113_v51 = vpop.eup %835  ;;  %847 = vrcp.f32 %v1101_v42  ;;  %v1117_v54 = vadd.f32 %v967_v12, %v175_v47  ;;  %508 = vrot.lane.b32.xlu0 %v265_v48, %s897_s0  ;;  %v325_v58 = vsel %vm1037_vm3, %v1029_v56, %v320_v52  ;;  %v375_v60 = vmul.f32 %v1069_v20, %v374_v49  ;;  %v185_v55 = vpop.f32.mrf.mxu3 }
  0xaf   :  { %v838_v59 = vpop.eup %837  ;;  %849 = vrcp.f32 %v1109_v33  ;;  %vm1130_vm11 = vcmp.eq.f32.partialorder %v381_v19, 8.507059e+37  ;;  %516 = vrot.lane.b32.xlu2 %v325_v58, %s897_s0  ;;  %v434_v3 = vsub.f32 1.0, %v433_v57  ;;  %vm438_vm12 = vweird.f32 %v1075_v28 }
  0xb0   :  { %v840_v63 = vpop.eup %839  ;;  %v1134_v0 = vadd.f32 1.0, %v838_v59  ;;  %851 = vpow2.f32 %v768_v36  ;;  %v772_v2 = vmul.f32 -1.442695, %v1117_v54  ;;  %v376_v56 = vadd.f32 %v1069_v20, %v375_v60 }
  0xb1   :  { %v1138_v4 = vpop.eup %841  ;;  %v1140_v62 = vadd.f32 1.0, %v840_v63  ;;  %v441_v7 = vand.u32 2147483647, %v1022_v53  ;;  %v435_v14 = vmul.f32 %v1075_v28, %v434_v3  ;;  %v443_v17 = vand.u32 2147483648, %v1022_v53 }
  0xb2   :  { %v844_v9 = vpop.eup %843  ;;  %853 = vrcp.f32 %v1134_v0  ;;  %v1157_v18 = vadd.f32 %v967_v12, %v185_v55  ;;  %v380_v50 = vsel %vm1150_vm13, %v1069_v20, %v376_v56  ;;  %v384_v27 = vor.u32 1.1754944e-38, %v383_v31 }
  0xb3   :  { %v846_v19 = vpop.eup %845  ;;  %855 = vrcp.f32 %v1140_v62  ;;  %v1160_v24 = vadd.f32 1.0, %v844_v9  ;;  %v436_v32 = vadd.f32 %v1075_v28, %v435_v14  ;;  %vm437_vm14 = vweird.f32 %v1022_v53 }
  0xb4   :  { %v848_v29 = vpop.eup %847  ;;  %v1165_v30 = vadd.f32 1.0, %v846_v19  ;;  %857 = vpow2.f32 %v772_v2  ;;  %vm439_vm15 = vmor %vm437_vm14, %vm438_vm12  ;;  %v444_v34 = vor.u32 1.1754944e-38, %v443_v17  ;;  %v776_v35 = vmul.f32 -1.442695, %v1157_v18 }
  0xb5   :  { %v1169_v12 = vpop.eup %849  ;;  %859 = vrcp.f32 %v1160_v24  ;;  %v448_v20 = vmul.f32 %v848_v29, %v1101_v42  ;;  %v385_v39 = vsel %vm1130_vm11, %v384_v27, %v380_v50  ;;  %v440_v53 = vsel %vm439_vm15, %v1075_v28, %v436_v32 }
  0xb6   :  { %v852_v36 = vpop.eup %851  ;;  %861 = vrcp.f32 %v1165_v30  ;;  %vm442_vm0 = vcmp.eq.f32.partialorder %v441_v7, 8.507059e+37  ;;  %vm452_vm1 = vweird.f32 %v1101_v42  ;;  %v456_v47 = vand.u32 2147483647, %v1101_v42 }
  0xb7   :  { %v1180_v31 = vadd.f32 1.0, %v852_v36  ;;  %v445_v40 = vsel %vm442_vm0, %v444_v34, %v440_v53  ;;  %863 = vpow2.f32 %v776_v35  ;;  %v449_v43 = vsub.f32 1.0, %v448_v20  ;;  %524 = vrot.lane.b32.xlu2 %v385_v39, %s897_s0 }
  0xb8   :  { %v1182_v44 = vpop.eup %853  ;;  %532 = vrot.lane.b32.xlu0 %v445_v40, %s897_s0  ;;  %v458_v48 = vand.u32 2147483648, %v1101_v42  ;;  %v328_v28 = vmul.f32 %v1113_v51, %v1049_v5  ;;  %vm453_vm2 = vweird.f32 %v848_v29  ;;  %vm332_vm3 = vweird.f32 %v1049_v5 }
  0xb9   :  { %v1191_v49 = vpop.eup %855  ;;  %v450_v52 = vmul.f32 %v848_v29, %v449_v43  ;;  %v336_v57 = vand.u32 2147483647, %v1049_v5  ;;  %865 = vrcp.f32 %v1180_v31  ;;  %vm333_vm4 = vweird.f32 %v1113_v51  ;;  %vm454_vm6 = vmor %vm452_vm1, %vm453_vm2 }
  0xba   :  { %v858_v59 = vpop.eup %857  ;;  %v329_v58 = vsub.f32 1.0, %v328_v28  ;;  %v338_v60 = vand.u32 2147483648, %v1049_v5  ;;  %vm457_vm5 = vcmp.eq.f32.partialorder %v456_v47, 8.507059e+37  ;;  %v268_v2 = vmul.f32 %v1107_v45, %v1046_v1  ;;  %vm1217_vm8 = vmor %vm332_vm3, %vm333_vm4 }
  0xbb   :  { %v1198_v61 = vpop.eup %859  ;;  %v1200_v55 = vadd.f32 1.0, %v858_v59  ;;  %v451_v63 = vadd.f32 %v848_v29, %v450_v52  ;;  %v459_v56 = vor.u32 1.1754944e-38, %v458_v48  ;;  %vm1209_vm7 = vcmp.eq.f32.partialorder %v336_v57, 8.507059e+37 }
  0xbc   :  { %v1204_v3 = vpop.eup %861  ;;  %v330_v7 = vmul.f32 %v1113_v51, %v329_v58  ;;  %v339_v13 = vor.u32 1.1754944e-38, %v338_v60  ;;  %v269_v42 = vsub.f32 1.0, %v268_v2  ;;  %vm272_vm9 = vweird.f32 %v1046_v1 }
  0xbd   :  { %v864_v14 = vpop.eup %863  ;;  %v455_v17 = vsel %vm454_vm6, %v848_v29, %v451_v63  ;;  %v276_v50 = vand.u32 2147483647, %v1046_v1  ;;  %v278_v29 = vand.u32 2147483648, %v1046_v1  ;;  %867 = vrcp.f32 %v1200_v55 }
  0xbe   :  { %v1223_v27 = vadd.f32 1.0, %v864_v14  ;;  %v460_v32 = vsel %vm457_vm5, %v459_v56, %v455_v17  ;;  %v331_v34 = vadd.f32 %v1113_v51, %v330_v7  ;;  %v270_v5 = vmul.f32 %v1107_v45, %v269_v42 }
  0xbf   :  { %534 = vrot.lane.b32.xlu1 %v460_v32, %s897_s0  ;;  %vm273_vm10 = vweird.f32 %v1107_v45  ;;  %v283_v35 = vmul.f32 %v1169_v12, %v1109_v33  ;;  %v1233_v20 = vpop.eup %865  ;;  %vm1239_vm11 = vcmp.eq.f32.partialorder %v276_v50, 8.507059e+37  ;;  %vm287_vm12 = vweird.f32 %v1109_v33 }
  0xc0   :  { %869 = vrcp.f32 %v1223_v27  ;;  %v335_v36 = vsel %vm1217_vm8, %v1113_v51, %v331_v34  ;;  %v271_v40 = vadd.f32 %v1107_v45, %v270_v5  ;;  %v291_v47 = vand.u32 2147483647, %v1109_v33  ;;  %vm274_vm13 = vmor %vm272_vm9, %vm273_vm10 }
  0xc1   :  { %v340_v53 = vsel %vm1209_vm7, %v339_v13, %v335_v36  ;;  %v284_v43 = vsub.f32 1.0, %v283_v35  ;;  %v279_v51 = vor.u32 1.1754944e-38, %v278_v29  ;;  %vm288_vm14 = vweird.f32 %v1169_v12 }
  0xc2   :  { %518 = vrot.lane.b32.xlu2 %v340_v53, %s897_s0  ;;  %v293_v48 = vand.u32 2147483648, %v1109_v33  ;;  %v463_v28 = vmul.f32 %v1204_v3, %v1165_v30  ;;  %v275_v52 = vsel %vm274_vm13, %v1107_v45, %v271_v40  ;;  %vm467_vm15 = vweird.f32 %v1165_v30  ;;  %vm289_vm2 = vmor %vm287_vm12, %vm288_vm14 }
  0xc3   :  { %v285_v57 = vmul.f32 %v1169_v12, %v284_v43  ;;  %v471_v59 = vand.u32 2147483647, %v1165_v30  ;;  %v280_v1 = vsel %vm1239_vm11, %v279_v51, %v275_v52  ;;  %vm468_vm0 = vweird.f32 %v1204_v3  ;;  %v1263_v63 = vpop.eup %867 }
  0xc4   :  { %v464_v58 = vsub.f32 1.0, %v463_v28  ;;  %v473_v60 = vand.u32 2147483648, %v1165_v30  ;;  %510 = vrot.lane.b32.xlu0 %v280_v1, %s897_s0  ;;  %vm292_vm1 = vcmp.eq.f32.partialorder %v291_v47, 8.507059e+37  ;;  %v294_v2 = vor.u32 1.1754944e-38, %v293_v48  ;;  %vm1287_vm5 = vmor %vm467_vm15, %vm468_vm0 }
  0xc5   :  { %v286_v45 = vadd.f32 %v1169_v12, %v285_v57  ;;  %v388_v56 = vmul.f32 %v1138_v4, %v1071_v23  ;;  %vm1276_vm3 = vcmp.eq.f32.partialorder %v471_v59, 8.507059e+37  ;;  %vm392_vm4 = vweird.f32 %v1071_v23 }
  0xc6   :  { %v1269_v7 = vpop.eup %869  ;;  %v465_v9 = vmul.f32 %v1204_v3, %v464_v58  ;;  %v396_v14 = vand.u32 2147483647, %v1071_v23  ;;  %v474_v33 = vor.u32 1.1754944e-38, %v473_v60  ;;  %v403_v50 = vmul.f32 %v1191_v49, %v1140_v62 }
  0xc7   :  { %v290_v17 = vsel %vm289_vm2, %v1169_v12, %v286_v45  ;;  %v389_v42 = vsub.f32 1.0, %v388_v56  ;;  %vm393_vm6 = vweird.f32 %v1138_v4  ;;  %v398_v12 = vand.u32 2147483648, %v1071_v23 }
  0xc8   :  { %v295_v32 = vsel %vm292_vm1, %v294_v2, %v290_v17  ;;  %v466_v34 = vadd.f32 %v1204_v3, %v465_v9  ;;  %vm1298_vm7 = vcmp.eq.f32.partialorder %v396_v14, 8.507059e+37  ;;  %v404_v5 = vsub.f32 1.0, %v403_v50  ;;  %vm394_vm10 = vmor %vm392_vm4, %vm393_vm6 }
  0xc9   :  { %512 = vrot.lane.b32.xlu1 %v295_v32, %s897_s0  ;;  %v390_v30 = vmul.f32 %v1138_v4, %v389_v42  ;;  %vm407_vm8 = vweird.f32 %v1140_v62  ;;  %vm408_vm9 = vweird.f32 %v1191_v49  ;;  %v413_v36 = vand.u32 2147483648, %v1140_v62 }
  0xca   :  { %v470_v35 = vsel %vm1287_vm5, %v1204_v3, %v466_v34  ;;  %v418_v39 = vmul.f32 %v1263_v63, %v1200_v55  ;;  %v405_v43 = vmul.f32 %v1191_v49, %v404_v5  ;;  %v411_v47 = vand.u32 2147483647, %v1140_v62  ;;  %vm409_vm13 = vmor %vm407_vm8, %vm408_vm9 }
  0xcb   :  { %v475_v53 = vsel %vm1276_vm3, %v474_v33, %v470_v35  ;;  %v391_v40 = vadd.f32 %v1138_v4, %v390_v30  ;;  %v399_v3 = vor.u32 1.1754944e-38, %v398_v12  ;;  %v414_v51 = vor.u32 1.1754944e-38, %v413_v36 }
  0xcc   :  { %536 = vrot.lane.b32.xlu2 %v475_v53, %s897_s0  ;;  %v419_v48 = vsub.f32 1.0, %v418_v39  ;;  %vm422_vm11 = vweird.f32 %v1200_v55  ;;  %v406_v52 = vadd.f32 %v1191_v49, %v405_v43  ;;  %vm423_vm12 = vweird.f32 %v1263_v63 }
  0xcd   :  { %v395_v28 = vsel %vm394_vm10, %v1138_v4, %v391_v40  ;;  %v428_v57 = vand.u32 2147483648, %v1200_v55  ;;  %v426_v1 = vand.u32 2147483647, %v1200_v55  ;;  %v343_v4 = vmul.f32 %v1182_v44, %v1134_v0  ;;  %vm424_vm1 = vmor %vm422_vm11, %vm423_vm12 }
  0xce   :  { %v400_v59 = vsel %vm1298_vm7, %v399_v3, %v395_v28  ;;  %v420_v23 = vmul.f32 %v1263_v63, %v419_v48  ;;  %v410_v58 = vsel %vm409_vm13, %v1191_v49, %v406_v52  ;;  %vm412_vm14 = vcmp.eq.f32.partialorder %v411_v47, 8.507059e+37 }
  0xcf   :  { %526 = vrot.lane.b32.xlu0 %v400_v59, %s897_s0  ;;  %vm347_vm15 = vweird.f32 %v1134_v0  ;;  %vm348_vm0 = vweird.f32 %v1182_v44  ;;  %v415_v60 = vsel %vm412_vm14, %v414_v51, %v410_v58  ;;  %v344_v45 = vsub.f32 1.0, %v343_v4 }
  0xd0   :  { %v421_v62 = vadd.f32 %v1263_v63, %v420_v23  ;;  %v351_v2 = vand.u32 2147483647, %v1134_v0  ;;  %v429_v56 = vor.u32 1.1754944e-38, %v428_v57  ;;  %v353_v49 = vand.u32 2147483648, %v1134_v0  ;;  %vm1356_vm4 = vmor %vm347_vm15, %vm348_vm0 }
  0xd1   :  { %528 = vrot.lane.b32.xlu1 %v415_v60, %s897_s0  ;;  %v298_v9 = vmul.f32 %v1198_v61, %v1160_v24  ;;  %vm427_vm2 = vcmp.eq.f32.partialorder %v426_v1, 8.507059e+37  ;;  %v345_v14 = vmul.f32 %v1182_v44, %v344_v45  ;;  %vm303_vm3 = vweird.f32 %v1198_v61 }
  0xd2   :  { %v425_v13 = vsel %vm424_vm1, %v1263_v63, %v421_v62  ;;  %v354_v19 = vor.u32 1.1754944e-38, %v353_v49  ;;  %v306_v42 = vand.u32 2147483647, %v1160_v24  ;;  %vm352_vm5 = vcmp.eq.f32.partialorder %v351_v2, 8.507059e+37 }
  0xd3   :  { %v430_v17 = vsel %vm427_vm2, %v429_v56, %v425_v13  ;;  %v299_v33 = vsub.f32 1.0, %v298_v9  ;;  %v346_v63 = vadd.f32 %v1182_v44, %v345_v14  ;;  %v308_v50 = vand.u32 2147483648, %v1160_v24 }
  0xd4   :  { %530 = vrot.lane.b32.xlu2 %v430_v17, %s897_s0  ;;  %v478_v32 = vmul.f32 %v1269_v7, %v1223_v27  ;;  %vm482_vm6 = vweird.f32 %v1223_v27  ;;  %vm483_vm7 = vweird.f32 %v1269_v7  ;;  %v486_v34 = vand.u32 2147483647, %v1223_v27 }
  0xd5   :  { %v300_v0 = vmul.f32 %v1198_v61, %v299_v33  ;;  %v350_v12 = vsel %vm1356_vm4, %v1182_v44, %v346_v63  ;;  %v488_v29 = vand.u32 2147483648, %v1223_v27  ;;  %v358_v5 = vmul.f32 %v1233_v20, %v1180_v31  ;;  %vm484_vm12 = vmor %vm482_vm6, %vm483_vm7 }
  0xd6   :  { %v479_v30 = vsub.f32 1.0, %v478_v32  ;;  %v355_v35 = vsel %vm352_vm5, %v354_v19, %v350_v12  ;;  %vm302_vm8 = vweird.f32 %v1160_v24  ;;  %vm307_vm9 = vcmp.eq.f32.partialorder %v306_v42, 8.507059e+37 }
  0xd7   :  { %v301_v36 = vadd.f32 %v1198_v61, %v300_v0  ;;  %520 = vrot.lane.b32.xlu0 %v355_v35, %s897_s0  ;;  %vm304_vm10 = vmor %vm302_vm8, %vm303_vm3  ;;  %v309_v39 = vor.u32 1.1754944e-38, %v308_v50  ;;  %vm1382_vm11 = vcmp.eq.f32.partialorder %v486_v34, 8.507059e+37  ;;  %v359_v40 = vsub.f32 1.0, %v358_v5 }
  0xd8   :  { %v480_v44 = vmul.f32 %v1269_v7, %v479_v30  ;;  %v489_v24 = vor.u32 1.1754944e-38, %v488_v29  ;;  %vm362_vm13 = vweird.f32 %v1180_v31  ;;  %vm363_vm14 = vweird.f32 %v1233_v20 }
  0xd9   :  { %v305_v43 = vsel %vm304_vm10, %v1198_v61, %v301_v36  ;;  %v360_v51 = vmul.f32 %v1233_v20, %v359_v40  ;;  %v368_v48 = vand.u32 2147483648, %v1180_v31  ;;  %v366_v61 = vand.u32 2147483647, %v1180_v31  ;;  %vm364_vm15 = vmor %vm362_vm13, %vm363_vm14 }
  0xda   :  { %v310_v47 = vsel %vm307_vm9, %v309_v39, %v305_v43  ;;  %v481_v3 = vadd.f32 %v1269_v7, %v480_v44  ;;  %vm556_vm1 = vcmask 31744   ;;  %vm638_vm2 = vcmask 7168  }
  0xdb   :  { %514 = vrot.lane.b32.xlu1 %v310_v47, %s897_s0  ;;  %v361_v27 = vadd.f32 %v1233_v20, %v360_v51  ;;  %v369_v57 = vor.u32 1.1754944e-38, %v368_v48  ;;  %vm367_vm0 = vcmp.eq.f32.partialorder %v366_v61, 8.507059e+37  ;;  %vm20_vm3 = vcmask 0  }
  0xdc   :  { %v485_v28 = vsel %vm484_vm12, %v1269_v7, %v481_v3 }
  0xdd   :  { %v490_v52 = vsel %vm1382_vm11, %v489_v24, %v485_v28  ;;  %v365_v59 = vsel %vm364_vm15, %v1233_v20, %v361_v27 }
  0xde   :  { %v370_v23 = vsel %vm367_vm0, %v369_v57, %v365_v59 }
  0xdf   :  { %538 = vrot.lane.b32.xlu0 %v490_v52, %s897_s0 }
  0xe3   :  { %522 = vrot.lane.b32.xlu1 %v370_v23, %s897_s0 }
 0x109   :  { %v517_v7 = vpop.permute.xlu2 %516 }
 0x10a   :  { %v569_v4 = vsel %vm556_vm1, %v517_v7, 0.0 }
 0x111   :  { %v525_v62 = vpop.permute.xlu2 %524 }
 0x112   :  { %v581_v0 = vsel %vm556_vm1, %v525_v62, 0.0 }
 0x11c   :  { %v519_v49 = vpop.permute.xlu2 %518 }
 0x11d   :  { %v572_v9 = vsel %vm556_vm1, %v519_v49, 0.0 }
 0x120   :  { %v509_v1 = vpop.permute.xlu0 %508 }
 0x121   :  { %v557_v31 = vsel %vm556_vm1, %v509_v1, 0.0 }
 0x122   :  { %558 = vadd.xlane.f32.xlu1 %v557_v31 }
 0x126   :  { %v537_v42 = vpop.permute.xlu2 %536 }
 0x127   :  { %v599_v39 = vsel %vm556_vm1, %v537_v42, 0.0 }
 0x12a   :  { %570 = vadd.xlane.f32.xlu1 %v569_v4  ;;  %v533_v58 = vpop.permute.xlu0 %532 }
 0x12b   :  { %v593_v12 = vsel %vm556_vm1, %v533_v58, 0.0 }
 0x12e   :  { %v531_v34 = vpop.permute.xlu2 %530 }
 0x12f   :  { %v590_v29 = vsel %vm556_vm1, %v531_v34, 0.0 }
 0x131   :  { %v535_v60 = vpop.permute.xlu1 %534 }
 0x132   :  { %v596_v36 = vsel %vm556_vm1, %v535_v60, 0.0 }
 0x136   :  { %v511_v45 = vpop.permute.xlu0 %510 }
 0x137   :  { %v560_v20 = vsel %vm556_vm1, %v511_v45, 0.0 }
 0x138   :  { %561 = vadd.xlane.f32.xlu2 %v560_v20 }
 0x13b   :  { %v513_v2 = vpop.permute.xlu1 %512 }
 0x13c   :  { %v563_v56 = vsel %vm556_vm1, %v513_v2, 0.0 }
 0x13d   :  { %564 = vadd.xlane.f32.xlu0 %v563_v56 }
 0x140   :  { %573 = vadd.xlane.f32.xlu2 %v572_v9 }
 0x141   :  { %v527_v13 = vpop.permute.xlu0 %526 }
 0x142   :  { %v584_v63 = vsel %vm556_vm1, %v527_v13, 0.0 }
 0x143   :  { %v529_v14 = vpop.permute.xlu1 %528 }
 0x144   :  { %v587_v30 = vsel %vm556_vm1, %v529_v14, 0.0 }
 0x149   :  { %v521_v17 = vpop.permute.xlu0 %520 }
 0x14a   :  { %v575_v55 = vsel %vm556_vm1, %v521_v17, 0.0 }
 0x14b   :  { %576 = vadd.xlane.f32.xlu0 %v575_v55 }
 0x14d   :  { %v515_v19 = vpop.permute.xlu1 %514 }
 0x14e   :  { %v566_v33 = vsel %vm556_vm1, %v515_v19, 0.0 }
 0x14f   :  { %567 = vadd.xlane.f32.xlu2 %v566_v33 }
 0x151   :  { %v539_v5 = vpop.permute.xlu0 %538 }
 0x152   :  { %v602_v35 = vsel %vm556_vm1, %v539_v5, 0.0 }
 0x153   :  { %585 = vadd.xlane.f32.xlu0 %v584_v63 }
 0x155   :  { %v523_v50 = vpop.permute.xlu1 %522 }
 0x156   :  { %v578_v32 = vsel %vm556_vm1, %v523_v50, 0.0 }
 0x157   :  { %579 = vadd.xlane.f32.xlu1 %v578_v32  ;;  %582 = vadd.xlane.f32.xlu2 %v581_v0 }
 0x15b   :  { %594 = vadd.xlane.f32.xlu0 %v593_v12 }
 0x15f   :  { %588 = vadd.xlane.f32.xlu1 %v587_v30  ;;  %591 = vadd.xlane.f32.xlu2 %v590_v29 }
 0x163   :  { %603 = vadd.xlane.f32.xlu0 %v602_v35 }
 0x167   :  { %597 = vadd.xlane.f32.xlu1 %v596_v36  ;;  %600 = vadd.xlane.f32.xlu2 %v599_v39 }
 0x195   :  { %v559_v53 = vpop.xlane.xlu1 %558 }
 0x196   :  { %v605_v47 = vmul.f32 0.25, %v559_v53 }
 0x198   :  { %v621_v61 = vmul.f32 %v605_v47, %v970_v15 }
 0x19a   :  { %v639_v23 = vsel %vm638_vm2, %v621_v61, 0.0 }
 0x19d   :  { %v571_v48 = vpop.xlane.xlu1 %570 }
 0x19e   :  { %v609_v52 = vmul.f32 0.25, %v571_v48 }
 0x1ab   :  { %v562_v44 = vpop.xlane.xlu2 %561 }
 0x1ac   :  { %v606_v43 = vmul.f32 0.25, %v562_v44 }
 0x1ae   :  { %v622_v51 = vmul.f32 %v606_v43, %v984_v25  ;;  %v625_v25 = vmul.f32 %v609_v52, %v973_v16 }
 0x1b0   :  { %v565_v40 = vpop.xlane.xlu0 %564  ;;  %v640_v57 = vsel %vm638_vm2, %v622_v51, 0.0  ;;  %v646_v2 = vsel %vm638_vm2, %v625_v25, 0.0 }
 0x1b1   :  { %v607_v3 = vmul.f32 0.25, %v565_v40  ;;  %v641_v4 = vadd.f32 %v640_v57, %v639_v23 }
 0x1b3   :  { %v574_v24 = vpop.xlane.xlu2 %573  ;;  %v623_v28 = vmul.f32 %v607_v3, %v1006_v41 }
 0x1b4   :  { %v610_v31 = vmul.f32 0.25, %v574_v24 }
 0x1b5   :  { %v642_v1 = vsel %vm638_vm2, %v623_v28, 0.0 }
 0x1b6   :  { %v643_v60 = vadd.f32 %v642_v1, %v641_v4  ;;  %v626_v41 = vmul.f32 %v610_v31, %v987_v26 }
 0x1b8   :  { %v648_v14 = vsel %vm638_vm2, %v626_v41, 0.0 }
 0x1be   :  { %v577_v27 = vpop.xlane.xlu0 %576 }
 0x1bf   :  { %v611_v58 = vmul.f32 0.25, %v577_v27 }
 0x1c1   :  { %v627_v56 = vmul.f32 %v611_v58, %v1012_v46 }
 0x1c2   :  { %v568_v59 = vpop.xlane.xlu2 %567 }
 0x1c3   :  { %v608_v7 = vmul.f32 0.25, %v568_v59 }
 0x1c5   :  { %v624_v15 = vmul.f32 %v608_v7, %v1059_v10  ;;  %v650_v10 = vsel %vm638_vm2, %v627_v56, 0.0  ;;  %v898_v7 = vmov 0.0  }
 0x1c6   :  { %v586_v45 = vpop.xlane.xlu0 %585  ;;  %21 = vst.msk [vmem:[#allocation2] sm:$0x1] %vm20_vm3, %v898_v7 }
 0x1c7   :  { %v644_v62 = vsel %vm638_vm2, %v624_v15, 0.0  ;;  %v614_v19 = vmul.f32 0.25, %v586_v45 }
 0x1c8   :  { %v645_v20 = vadd.f32 %v644_v62, %v643_v60 }
 0x1c9   :  { %v630_v32 = vmul.f32 %v614_v19, %v1000_v37 }
 0x1ca   :  { %v647_v49 = vadd.f32 %v646_v2, %v645_v20  ;;  %v580_v9 = vpop.xlane.xlu1 %579  ;;  %v583_v13 = vpop.xlane.xlu2 %582 }
 0x1cb   :  { %v612_v16 = vmul.f32 0.25, %v580_v9  ;;  %v613_v17 = vmul.f32 0.25, %v583_v13  ;;  %v656_v35 = vsel %vm638_vm2, %v630_v32, 0.0 }
 0x1cc   :  { %v649_v55 = vadd.f32 %v648_v14, %v647_v49 }
 0x1cd   :  { %v628_v26 = vmul.f32 %v612_v16, %v1062_v11  ;;  %v629_v33 = vmul.f32 %v613_v17, %v978_v21  ;;  %v637_v60 = vld [vmem:[#allocation2] sm:$0x1] }
 0x1ce   :  { %v651_v42 = vadd.f32 %v650_v10, %v649_v55  ;;  %v595_v50 = vpop.xlane.xlu0 %594 }
 0x1cf   :  { %v652_v63 = vsel %vm638_vm2, %v628_v26, 0.0  ;;  %v654_v0 = vsel %vm638_vm2, %v629_v33, 0.0  ;;  %v617_v36 = vmul.f32 0.25, %v595_v50 }
 0x1d0   :  { %v653_v46 = vadd.f32 %v652_v63, %v651_v42 }
 0x1d1   :  { %v633_v37 = vmul.f32 %v617_v36, %v981_v22 }
 0x1d2   :  { %v655_v34 = vadd.f32 %v654_v0, %v653_v46  ;;  %v589_v12 = vpop.xlane.xlu1 %588  ;;  %v592_v30 = vpop.xlane.xlu2 %591 }
 0x1d3   :  { %v615_v29 = vmul.f32 0.25, %v589_v12  ;;  %v616_v5 = vmul.f32 0.25, %v592_v30  ;;  %v662_v28 = vsel %vm638_vm2, %v633_v37, 0.0 }
 0x1d4   :  { %v657_v39 = vadd.f32 %v656_v35, %v655_v34 }
 0x1d5   :  { %v631_v11 = vmul.f32 %v615_v29, %v1052_v6  ;;  %v632_v21 = vmul.f32 %v616_v5, %v1117_v54 }
 0x1d6   :  { %v604_v40 = vpop.xlane.xlu0 %603 }
 0x1d7   :  { %v658_v44 = vsel %vm638_vm2, %v631_v11, 0.0  ;;  %v660_v43 = vsel %vm638_vm2, %v632_v21, 0.0  ;;  %v620_v51 = vmul.f32 0.25, %v604_v40 }
 0x1d8   :  { %v659_v53 = vadd.f32 %v658_v44, %v657_v39 }
 0x1d9   :  { %v636_v52 = vmul.f32 %v620_v51, %v1157_v18 }
 0x1da   :  { %v661_v24 = vadd.f32 %v660_v43, %v659_v53  ;;  %v598_v47 = vpop.xlane.xlu1 %597  ;;  %v601_v3 = vpop.xlane.xlu2 %600 }
 0x1db   :  { %v618_v48 = vmul.f32 0.25, %v598_v47  ;;  %v619_v61 = vmul.f32 0.25, %v601_v3  ;;  %v668_v1 = vsel %vm638_vm2, %v636_v52, 0.0 }
 0x1dc   :  { %v663_v27 = vadd.f32 %v662_v28, %v661_v24 }
 0x1dd   :  { %v634_v6 = vmul.f32 %v618_v48, %v1003_v38  ;;  %v635_v54 = vmul.f32 %v619_v61, %v1055_v8 }
 0x1df   :  { %v664_v57 = vsel %vm638_vm2, %v634_v6, 0.0  ;;  %v666_v59 = vsel %vm638_vm2, %v635_v54, 0.0 }
 0x1e0   :  { %v665_v22 = vadd.f32 %v664_v57, %v663_v27 }
 0x1e2   :  { %v667_v23 = vadd.f32 %v666_v59, %v665_v22 }
 0x1e4   :  { %v669_v31 = vadd.f32 %v668_v1, %v667_v23 }
 0x1e6   :  { %670 = vadd.xlane.f32.xlu1 %v669_v31 }
 0x259   :  { %v671_v38 = vpop.xlane.xlu1 %670 }
 0x25a   :  { %v672_v4 = vrot.slane %v671_v38, 4 }
 0x25c   :  { %v673_v8 = vadd.f32 %v672_v4, %v671_v38 }
 0x25e   :  { %v674_v25 = vrot.slane %v673_v8, 2 }
 0x260   :  { %v675_v58 = vadd.f32 %v674_v25, %v673_v8 }
 0x262   :  { %v676_v18 = vrot.slane %v675_v58, 1 }
 0x264   :  { %v677_v15 = vadd.f32 %v676_v18, %v675_v58 }
 0x266   :  { %801 = vpush %v677_v15 }
 0x297   :  { %s802_s2 = spop %801 }
 0x298   :  { %v679_v41 = vstv %s802_s2 }
 0x299   :  { %v680_v62 = vadd.f32 %v679_v41, %v637_v60 }
 0x29b   :  { %682 = vst.msk [vmem:[#allocation2] sm:$0x1] %vm20_vm3, %v680_v62 }
 0x2a2   :  { %v686_v45 = vld [vmem:[#allocation2] sm:$0x1] }
 0x2a3   :  { %v687_v20 = vmul.f32 0.0078125, %v686_v45 }
 0x2a5   :  { %688 = vst.msk [vmem:[#allocation2] sm:$0x1] %vm20_vm3, %v687_v20 }
 0x2a6   :  { %699 = dma.vmem_to_hbm [thread:$0]  %s695_s11, 16, %s697_s14, [#allocation3]  }
 0x2a7   :  { %895 = dma.done.wait [#allocation3], 16  }
 0x2a8   :  { %896 = vsyncadd [#allocation3], 4294967280 }
 0x2a9   :  { %704 = vsyncpa [#allocation3], 1 }

</bundles_post_ra>
